<compile_context>
chip_gen: v6e
topology: v6e:2x2x1
jax: 0.10.0
libtpu: 0.0.40
codegen_flags: <defaults>
</compile_context>

<pallas_src>
import functools

import jax
import jax.numpy as jnp
from jax.experimental import pallas as pl
from jax.experimental.pallas import tpu as pltpu


def _vi_fused_kernel(x_ref, w0_ref, w1bd_ref, bias_ref, out_ref):
    """Fused forward over ALL MC samples in a single kernel step.

    x_ref    : (Bn, D)       batch tile
    w0_ref   : (D, M*H)      all W0 MC samples stacked along the lane axis
    w1bd_ref : (M*H, M*C)    block-diagonal W1 (block m = W1 body, sample m)
    bias_ref : (1, M*C)      W1 bias row (the folded ones-column), tiled per m
    out_ref  : (Bn, M*C)     lane-dense predictions
    """
    x = x_ref[...]
    # Hidden layer for every MC sample in one MXU pass + ReLU on the VPU.
    z = jnp.maximum(
        jnp.dot(x, w0_ref[...], preferred_element_type=jnp.float32), 0.0)
    # Second layer for every MC sample in one MXU pass (block-diagonal W1).
    pred = jnp.dot(z, w1bd_ref[...], preferred_element_type=jnp.float32)
    out_ref[...] = (pred + bias_ref[...]).astype(out_ref.dtype)


def _unpack_and_sample(params, key, *, d, d_h, num_samps_w0, num_samps_w1):
    """Parameter unpacking + MC weight sampling (plain JAX glue)."""
    len_m = d * d_h
    m_pri_len = d_h + 1

    m_w0 = params[0:len_m]
    m_pri = params[len_m:len_m + m_pri_len]
    v_w0 = jnp.abs(params[len_m + m_pri_len:len_m + m_pri_len + len_m]) + 1e-6
    v_pri = jnp.abs(params[len_m + m_pri_len + len_m:]) + 1e-6

    k0, k1 = jax.random.split(key)
    # Sample eps0 directly in (D, M, H) layout so the lane-stacked (D, M*H)
    # W0 operand is a contiguous (free) reshape -- no transpose in the wrapper.
    eps0 = jax.random.normal(
        k0, (d, num_samps_w0, d_h), dtype=jnp.float32)
    m_w0_2d = m_w0.reshape(d, d_h)
    sd_w0_2d = jnp.sqrt(v_w0).reshape(d, d_h)
    w0_dmh = m_w0_2d[:, None, :] + eps0 * sd_w0_2d[:, None, :]     # (D, M, H)

    eps1 = jax.random.normal(k1, (m_pri_len, num_samps_w1), dtype=jnp.float32)
    samps_w1 = m_pri[:, None] + eps1 * jnp.sqrt(v_pri)[:, None]     # (H+1, C)

    return m_w0, v_w0, m_pri, v_pri, w0_dmh, samps_w1


@functools.partial(jax.jit, static_argnames=("d_h", "num_samps_w0", "num_samps_w1"))
def nn_model_forward(params, x, key, *, d_h, num_samps_w0, num_samps_w1):
    """JAX/Pallas equivalent of NN_Model.forward.

    params: 1-D vector of length 2*len_m + 2*(d_h+1)
    x:      (N, D) with D = data_dim + 1 (bias column already in x)
    Returns (pred_samps, m_w0, v_w0, m_pri, v_pri) like the PyTorch module.
    """
    n, d = x.shape
    M, C, H = num_samps_w0, num_samps_w1, d_h

    m_w0, v_w0, m_pri, v_pri, w0_dmh, samps_w1 = _unpack_and_sample(
        params, key, d=d, d_h=d_h, num_samps_w0=M, num_samps_w1=C)

    # --- lane-stacked operands (all reshapes are contiguous => free) ---
    w0_stack = w0_dmh.reshape(d, M * H)                  # (D, M*H)
    w1_body = samps_w1[1:, :]                            # (H, C)
    w1_bias = samps_w1[0:1, :]                           # (1, C)  (ones-column fold)
    # Block-diagonal W1 so the per-sample second matmul fuses into a single
    # (N, M*H) @ (M*H, M*C) MXU pass. Tiny (M*H x M*C), built once.
    w1_bd = jnp.kron(jnp.eye(M, dtype=jnp.float32), w1_body)   # (M*H, M*C)
    bias_tiled = jnp.tile(w1_bias, (1, M))               # (1, M*C)

    # --- hot path: one fused kernel, grid only over the batch axis ---
    block_n = n if n <= 1024 else 1024
    grid = (pl.cdiv(n, block_n),)

    out = pl.pallas_call(
        _vi_fused_kernel,
        out_shape=jax.ShapeDtypeStruct((n, M * C), jnp.float32),
        grid=grid,
        in_specs=[
            pl.BlockSpec((block_n, d), lambda i: (i, 0)),        # x batch tile
            pl.BlockSpec((d, M * H), lambda i: (0, 0)),          # W0 (broadcast)
            pl.BlockSpec((M * H, M * C), lambda i: (0, 0)),      # block-diag W1
            pl.BlockSpec((1, M * C), lambda i: (0, 0)),          # tiled bias
        ],
        out_specs=pl.BlockSpec((block_n, M * C), lambda i: (i, 0)),
        compiler_params=pltpu.CompilerParams(
            dimension_semantics=("parallel",)),
    )(x, w0_stack, w1_bd, bias_tiled)

    # (N, M*C) -> (N, M, C) is a contiguous (free) reshape and already matches
    # torch.einsum('ndm,dc->nmc') output ordering: no transpose needed.
    pred_samps = out.reshape(n, M, C)
    return pred_samps, m_w0, v_w0, m_pri, v_pri


def _reference_from_samples(x, w0_dmh, samps_w1):
    """Pure-JAX reference mirroring the PyTorch forward line-by-line, fed with
    the SAME sampled weights as the Pallas path (validates the kernel math)."""
    n = x.shape[0]
    M = w0_dmh.shape[1]
    hp = jax.lax.Precision.HIGHEST
    w0_dhm = jnp.transpose(w0_dmh, (0, 2, 1))            # (D, H, M) torch layout
    x_w0 = jnp.einsum('nd,dhm->nhm', x, w0_dhm, precision=hp)
    z = jnp.maximum(x_w0, 0.0)
    z = jnp.concatenate([jnp.ones((n, 1, M), jnp.float32), z], axis=1)
    return jnp.einsum('ndm,dc->nmc', z, samps_w1, precision=hp)


if __name__ == "__main__":
    # Small deterministic shapes consistent with the module:
    #   data_dim = 7 -> D = data_dim + 1 = 8, d_h = 8 -> len_m = 64
    N = 8
    D = 8
    D_H = 8
    NUM_W0 = 4
    NUM_W1 = 4
    LEN_M = D * D_H
    PARAM_LEN = 2 * LEN_M + 2 * (D_H + 1)

    root = jax.random.PRNGKey(0)
    k_params, k_x, k_samp = jax.random.split(root, 3)
    params = 0.1 * jax.random.normal(k_params, (PARAM_LEN,), dtype=jnp.float32)
    x = jax.random.normal(k_x, (N, D), dtype=jnp.float32)

    pred_samps, m_w0, v_w0, m_pri, v_pri = nn_model_forward(
        params, x, k_samp, d_h=D_H, num_samps_w0=NUM_W0, num_samps_w1=NUM_W1)
    jax.block_until_ready(pred_samps)

    # sanity check against a pure-JAX reference using the same sampled weights
    _, _, _, _, w0_dmh, samps_w1 = _unpack_and_sample(
        params, k_samp, d=D, d_h=D_H, num_samps_w0=NUM_W0, num_samps_w1=NUM_W1)
    ref = _reference_from_samples(x, w0_dmh, samps_w1)

    assert pred_samps.shape == (N, NUM_W0, NUM_W1)
    assert m_w0.shape == (LEN_M,) and v_w0.shape == (LEN_M,)
    assert m_pri.shape == (D_H + 1,) and v_pri.shape == (D_H + 1,)
    assert jnp.allclose(pred_samps, ref, atol=1e-4, rtol=1e-4)

    print("KERNEL_OK")
</pallas_src>

<mosaic_0001>
module attributes {stable_mosaic.version = 11 : i64} {
  func.func @_vi_fused_kernel(%arg0: i32, %arg1: memref<8x8xf32, #tpu.memory_space<vmem>>, %arg2: memref<8x32xf32, #tpu.memory_space<vmem>>, %arg3: memref<32x16xf32, #tpu.memory_space<vmem>>, %arg4: memref<1x16xf32, #tpu.memory_space<vmem>>, %arg5: memref<8x16xf32, #tpu.memory_space<vmem>>) attributes {dimension_semantics = [#tpu.dimension_semantics<parallel>], iteration_bounds = array<i64: 1>, scalar_prefetch = 0 : i64, scratch_operands = 0 : i64, tpu.core_type = #tpu.core_type<tc>, window_params = [{transform_indices = @transform_0, window_bounds = array<i64: 8, 8>}, {pipeline_mode = #tpu.pipeline_mode<synchronous>, transform_indices = @transform_1, window_bounds = array<i64: 8, 32>}, {pipeline_mode = #tpu.pipeline_mode<synchronous>, transform_indices = @transform_2, window_bounds = array<i64: 32, 16>}, {pipeline_mode = #tpu.pipeline_mode<synchronous>, transform_indices = @transform_3, window_bounds = array<i64: 1, 16>}, {transform_indices = @transform_4, window_bounds = array<i64: 8, 16>}]} {
    %c0 = arith.constant 0 : index
    %c0_0 = arith.constant 0 : index
    %0 = vector.load %arg1[%c0, %c0_0] : memref<8x8xf32, #tpu.memory_space<vmem>>, vector<8x8xf32>
    %c0_1 = arith.constant 0 : index
    %c0_2 = arith.constant 0 : index
    %1 = vector.load %arg2[%c0_1, %c0_2] : memref<8x32xf32, #tpu.memory_space<vmem>>, vector<8x32xf32>
    %cst = arith.constant dense<0.000000e+00> : vector<8x32xf32>
    %2 = tpu.matmul %0, %1, %cst {dimension_numbers = #tpu.dot_dimension_numbers<[1], [0], [0], [1], [0, 0, 1, 1], [], []>} : vector<8x8xf32>, vector<8x32xf32>, vector<8x32xf32> -> vector<8x32xf32>
    %cst_3 = arith.constant 0.000000e+00 : f32
    %3 = vector.broadcast %cst_3 : f32 to vector<8x32xf32>
    %4 = arith.maximumf %2, %3 : vector<8x32xf32>
    %c0_4 = arith.constant 0 : index
    %c0_5 = arith.constant 0 : index
    %5 = vector.load %arg3[%c0_4, %c0_5] : memref<32x16xf32, #tpu.memory_space<vmem>>, vector<32x16xf32>
    %cst_6 = arith.constant dense<0.000000e+00> : vector<8x16xf32>
    %6 = tpu.matmul %4, %5, %cst_6 {dimension_numbers = #tpu.dot_dimension_numbers<[1], [0], [0], [1], [0, 0, 1, 1], [], []>} : vector<8x32xf32>, vector<32x16xf32>, vector<8x16xf32> -> vector<8x16xf32>
    %c0_7 = arith.constant 0 : index
    %c0_8 = arith.constant 0 : index
    %7 = vector.load %arg4[%c0_7, %c0_8] : memref<1x16xf32, #tpu.memory_space<vmem>>, vector<1x16xf32>
    %8 = vector.broadcast %7 : vector<1x16xf32> to vector<8x16xf32>
    %9 = arith.addf %6, %8 : vector<8x16xf32>
    %c0_9 = arith.constant 0 : index
    %c0_10 = arith.constant 0 : index
    %10 = vector.load %arg5[%c0_9, %c0_10] : memref<8x16xf32, #tpu.memory_space<vmem>>, vector<8x16xf32>
    tpu.vector_store %arg5[%c0_9, %c0_10], %9 {strides = array<i32>} : memref<8x16xf32, #tpu.memory_space<vmem>>, vector<8x16xf32>,
    return
  }
  func.func @transform_0(%arg0: i32) -> (i32, i32) {
    %c0_i32 = arith.constant 0 : i32
    %c0_i32_0 = arith.constant 0 : i32
    return %arg0, %c0_i32 : i32, i32
  }
  func.func @transform_1(%arg0: i32) -> (i32, i32) {
    %c0_i32 = arith.constant 0 : i32
    %c0_i32_0 = arith.constant 0 : i32
    %c0_i32_1 = arith.constant 0 : i32
    return %c0_i32, %c0_i32_0 : i32, i32
  }
  func.func @transform_2(%arg0: i32) -> (i32, i32) {
    %c0_i32 = arith.constant 0 : i32
    %c0_i32_0 = arith.constant 0 : i32
    %c0_i32_1 = arith.constant 0 : i32
    return %c0_i32, %c0_i32_0 : i32, i32
  }
  func.func @transform_3(%arg0: i32) -> (i32, i32) {
    %c0_i32 = arith.constant 0 : i32
    %c0_i32_0 = arith.constant 0 : i32
    %c0_i32_1 = arith.constant 0 : i32
    return %c0_i32, %c0_i32_0 : i32, i32
  }
  func.func @transform_4(%arg0: i32) -> (i32, i32) {
    %c0_i32 = arith.constant 0 : i32
    %c0_i32_0 = arith.constant 0 : i32
    return %arg0, %c0_i32 : i32, i32
  }
}

</mosaic_0001>

<bundles_post_ra>
// kernel: nn_model_forward.1
= control target key start
LH: loop header
LB: loop body
LE: loop exit
PB: predicated region body
PF: predicated region fallthrough
CT: control target
= control target key end

     0   :  { %vm19_vm0 = vcmask 64512   ;;  %v213_v0 = vmov 0.0   ;;  %vm214_vm1 = vmmov 0   ;;  %vm105_vm2 = vcmask 261120   ;;  %s264_s1 = inlined_call_operand.vmem [shape: f32[8,32], index: 1, kind: input, shape index: {}]   ;;  %s265_s0 = inlined_call_operand.vmem [shape: f32[8,8], index: 0, kind: input, shape index: {}]   ;;  %s266_s2 = inlined_call_operand.vmem [shape: f32[32,16], index: 2, kind: input, shape index: {}]   ;;  %s267_s3 = inlined_call_operand.vmem [shape: f32[1,16], index: 3, kind: input, shape index: {}]   ;;  %s268_s4 = inlined_call_operand.vmem [shape: f32[8,16], index: 4, kind: output, shape index: {}]  }
   0x1   :  { %195 = vmatprep.subr.mxu0 %v213_v0  ;;  %v18_v1 = vld [vmem:[%s264_s1] sm:$0xff]  ;;  %197 = vmatprep.mubr.msk.f32.mxu0 %vm214_vm1, %v213_v0  ;;  %v97_v3 = vld [vmem:[%s266_s2 + $0x18] sm:$0xff]  ;;  %v96_v4 = vld [vmem:[%s266_s2 + $0x10] sm:$0xff]  ;;  %vm179_vm3 = vcmask 130048  }
   0x2   :  { %v17_v2 = vld [vmem:[%s265_s0] sm:$0xff]  ;;  %196 = vmatpush3.msra.mxu0 %v18_v1  ;;  %200 = vmatprep.subr.mxu1 %v213_v0  ;;  %v95_v5 = vld [vmem:[%s266_s2 + $0x8] sm:$0xff] }
   0x3   :  { %198 = vmatmul.mubr.msk.f32.vlgmr.msra.gmra.mxu0 %vm19_vm0, %v17_v2  ;;  %201 = vmatpush3.msra.mxu1 %v97_v3  ;;  %v94_v6 = vld [vmem:[%s266_s2] sm:$0xff] }
   0x4   :  { %202 = vmatprep.subr.mxu1 %v213_v0  ;;  %208 = vmatprep.mubr.msk.f32.mxu1 %vm214_vm1, %v213_v0  ;;  %v186_v10 = vld [vmem:[%s267_s3] ss:$0 sm:$0xff] }
   0x5   :  { %203 = vmatpush3.msra.mxu1 %v96_v4 }
   0x6   :  { %204 = vmatprep.subr.mxu1 %v213_v0 }
   0x7   :  { %205 = vmatpush3.msra.mxu1 %v95_v5 }
   0x8   :  { %206 = vmatprep.subr.mxu1 %v213_v0 }
   0x9   :  { %207 = vmatpush3.msra.mxu1 %v94_v6 }
  0xc3   :  { %v89_v7 = vpop.f32.mrf.mxu0 }
  0xc4   :  { %v93_v8 = vmax.f32 %v89_v7, 0.0 }
  0xc5   :  { %v199_v9 = vpop.f32.mrf.mxu0 }
  0xc6   :  { %209 = vmatmul.mubr.msk.f32.vlgmr.msra.gmra.mxu1 %vm105_vm2, %v93_v8 }
 0x186   :  { %v175_v11 = vpop.f32.mrf.mxu1 }
 0x187   :  { %v176_v12 = vadd.f32 %v186_v10, %v175_v11 }
 0x188   :  { %v210_v13 = vpop.f32.mrf.mxu1 }
 0x189   :  { %180 = vst.msk [vmem:[%s268_s4] sm:$0xff] %vm179_vm3, %v176_v12 }

</bundles_post_ra>
